<compile_context>
chip_gen: v6e
topology: v6e:2x2x1
jax: 0.10.0
libtpu: 0.0.40
codegen_flags: <defaults>
</compile_context>

<pallas_src>
import functools

import jax
import jax.numpy as jnp
from jax.experimental import pallas as pl
from jax.experimental.pallas import tpu as pltpu


def _cdiv(a, b):
    return -(-a // b)


# ----------------------------- Pallas kernel -------------------------------

def _attention_block_kernel(g_ref, x_ref, wg_ref, wx_ref, b_ref, wpsi_ref,
                            bpsi_ref, out_ref, *, slices, use_mxu_psi):
    """Channels-first tiles: channels on sublanes, pixels on lanes.

      g_ref:    (Cg, tp)        x_ref:  (Cx, tp)      (activation dtype)
      wg_ref:   (Cm, Cg)        wx_ref: (Cm, Cx)      (BN-folded, act dtype)
      b_ref:    (Cm, 1)  f32  = bg_folded + bx_folded
      wpsi_ref: (1, Cm) [MXU path] or (Cm, 1) [VPU path], f32 (BN-folded)
      bpsi_ref: (1, 1)   f32
      out_ref:  (Cx, tp)

    `slices` is a static tuple of (offset, size) lane sub-chunks (multiples of
    128) so the post-matmul elementwise/reduce/sigmoid/scale chain stays small
    enough to live in vregs even for large pixel tiles.
    """
    wg = wg_ref[...]
    wx = wx_ref[...]
    b = b_ref[...]
    wpsi = wpsi_ref[...]
    bpsi = bpsi_ref[...]

    for off, size in slices:                      # static unrolled loop
        g = g_ref[:, off:off + size]
        x = x_ref[:, off:off + size]
        g1 = jnp.dot(wg, g, preferred_element_type=jnp.float32)
        x1 = jnp.dot(wx, x, preferred_element_type=jnp.float32)
        a = jnp.maximum(g1 + x1 + b, 0.0)                        # (Cm, size)
        if use_mxu_psi:
            # Large Cm: 1-row MXU matmul keeps the VPU/XLU slots free.
            p = jnp.dot(wpsi, a, preferred_element_type=jnp.float32) + bpsi
        else:
            # Small Cm: VPU multiply + sublane (XLU) reduce; a 1-column MXU
            # matmul would waste the systolic array.
            p = jnp.sum(a * wpsi, axis=0, keepdims=True) + bpsi
        psi = jax.nn.sigmoid(p)                                  # (1, size)
        out_ref[:, off:off + size] = (
            x.astype(jnp.float32) * psi).astype(out_ref.dtype)


# ------------------------- tile-size / VMEM tuning --------------------------

def _tpu_tuning():
    """Returns (target HBM bytes / grid step, VMEM working-set budget,
    vmem_limit_bytes), generation-aware."""
    kind = ""
    try:
        kind = jax.devices()[0].device_kind.lower()
    except Exception:
        pass
    if "v7" in kind:
        # 3.2 TB/s HBM but only 64 MiB physical VMEM per TensorCore.
        return 8 << 20, 36 << 20, 48 << 20
    if "v5" in kind:
        # ~0.82 TB/s HBM; default scoped VMEM is only 16 MiB -> raise it.
        return 2 << 20, 48 << 20, 64 << 20
    # v6e-ish default: ~1.4 TB/s HBM, 128 MiB physical VMEM.
    return 4 << 20, 48 << 20, 64 << 20


def _choose_tiling(HW, N, cg, cx, cm, act_bytes):
    """Pick (tp, HWp, n_tiles, sub-chunk slices, vmem_limit) from channel
    counts + generation.  All outputs are static Python values."""
    target_step_bytes, vmem_budget, vmem_limit = _tpu_tuning()

    chunks = _cdiv(HW, 128)                      # 128-lane chunks (min padding)

    # Lane sub-chunk for the post-matmul chain: cap Cm * sc_lanes * 4B per
    # intermediate at ~128 KiB so g1/x1/a don't blow past the vreg file.
    sc_lanes = max(128, min(4096, ((32768 // max(cm, 1)) // 128) * 128))

    # HBM traffic per 128-lane chunk per grid step (g in + x in + out).
    chunk_hbm = (cg + 2 * cx) * 128 * act_bytes
    tc = max(1, min(chunks, target_step_bytes // chunk_hbm))

    # VMEM budget: double-buffered g/x/out tiles + weights + sub-chunk
    # intermediates (g1, x1, a, psi in f32) + margin.
    fixed = (2 * cm * (cg + cx + 2) * 4) + (4 * cm * sc_lanes * 4) + (2 << 20)
    chunk_vmem = 2 * (cg + 2 * cx) * 128 * act_bytes
    tc = max(1, min(tc, (vmem_budget - fixed) // chunk_vmem))

    # Split the chunks as evenly as possible -> no almost-empty trailing tile.
    n_tiles = _cdiv(chunks, tc)
    if N == 1 and n_tiles == 1 and chunks >= 2:
        n_tiles = 2                              # keep both v7x TCs fed
    tc = _cdiv(chunks, n_tiles)
    tp = tc * 128
    HWp = n_tiles * tp

    # Static lane sub-chunk slices of one tile (all multiples of 128).
    slices = []
    off = 0
    while off < tp:
        size = min(sc_lanes, tp - off)
        slices.append((off, size))
        off += size
    return tp, HWp, n_tiles, tuple(slices), vmem_limit


# ---------------------------- pallas_call wrapper ----------------------------

def _attention_block_flat(g_flat, x_flat, wgT, wxT, b, wpsi, bpsi, *,
                          tp, HWp, n_tiles, slices, use_mxu_psi, vmem_limit):
    """g_flat: (N, Cg, HW), x_flat: (N, Cx, HW) -> (N, Cx, HW)."""
    N, cg, HW = g_flat.shape
    _, cx, _ = x_flat.shape
    cm = b.shape[0]

    if HWp != HW:
        # Padded x is zero -> padded out = 0 * psi = 0 -> sliced off below.
        g_flat = jnp.pad(g_flat, ((0, 0), (0, 0), (0, HWp - HW)))
        x_flat = jnp.pad(x_flat, ((0, 0), (0, 0), (0, HWp - HW)))

    grid = (N, n_tiles)
    full = lambda n, p: (0, 0)
    kernel = functools.partial(_attention_block_kernel,
                               slices=slices, use_mxu_psi=use_mxu_psi)

    out = pl.pallas_call(
        kernel,
        out_shape=jax.ShapeDtypeStruct((N, cx, HWp), x_flat.dtype),
        grid_spec=pltpu.PrefetchScalarGridSpec(
            num_scalar_prefetch=0,
            grid=grid,
            in_specs=[
                pl.BlockSpec((pl.Squeezed(), cg, tp),
                             lambda n, p: (n, 0, p)),            # g tile
                pl.BlockSpec((pl.Squeezed(), cx, tp),
                             lambda n, p: (n, 0, p)),            # x tile
                pl.BlockSpec((cm, cg), full),                    # Wg^T (folded)
                pl.BlockSpec((cm, cx), full),                    # Wx^T (folded)
                pl.BlockSpec((cm, 1), full),                     # bg + bx
                pl.BlockSpec(wpsi.shape, full),                  # wpsi (folded)
                pl.BlockSpec((1, 1), full),                      # bpsi (folded)
            ],
            out_specs=pl.BlockSpec((pl.Squeezed(), cx, tp),
                                   lambda n, p: (n, 0, p)),
        ),
        compiler_params=pltpu.CompilerParams(
            dimension_semantics=("parallel", "parallel"),
            vmem_limit_bytes=int(vmem_limit)),
    )(g_flat, x_flat, wgT, wxT, b, wpsi, bpsi)

    if HWp != HW:
        out = out[:, :, :HW]
    return out


@functools.partial(jax.jit, static_argnames=(
    "act_dtype", "tp", "HWp", "n_tiles", "slices", "use_mxu_psi", "vmem_limit"))
def _attention_block_impl(g, x, wgT, wxT, b, wpsi, bpsi, *, act_dtype, tp, HWp,
                          n_tiles, slices, use_mxu_psi, vmem_limit):
    N, cg, hg, wg_sp = g.shape
    _, cx, H, W = x.shape

    # F.pad(g, [diffX//2, diffX - diffX//2, diffY//2, diffY - diffY//2]);
    # static guard -> no extra HBM pass when the shapes already match.
    diffY, diffX = H - hg, W - wg_sp
    if diffY != 0 or diffX != 0:
        g = jnp.pad(g, ((0, 0), (0, 0),
                        (diffY // 2, diffY - diffY // 2),
                        (diffX // 2, diffX - diffX // 2)))

    # NCHW preserved: free VIEW of the spatial dims as one flat pixel axis.
    g_flat = g.reshape(N, cg, H * W).astype(act_dtype)
    x_flat = x.reshape(N, cx, H * W).astype(act_dtype)

    out_flat = _attention_block_flat(
        g_flat, x_flat, wgT, wxT, b, wpsi, bpsi,
        tp=tp, HWp=HWp, n_tiles=n_tiles, slices=slices,
        use_mxu_psi=use_mxu_psi, vmem_limit=vmem_limit)
    return out_flat.reshape(N, cx, H, W)


# ------------------------- parameter construction --------------------------

def _fold_bn(w, b, gamma, beta, mean, var, eps=1e-5):
    """Fold inference-mode BatchNorm into a preceding 1x1 conv (f32 math).

    w: (Cin, Cout) channels-last matmul weight, b: (Cout,). Returns f32."""
    w = w.astype(jnp.float32)
    b = b.astype(jnp.float32)
    s = gamma.astype(jnp.float32) / jnp.sqrt(var.astype(jnp.float32) + eps)
    t = beta.astype(jnp.float32) - mean.astype(jnp.float32) * s
    return w * s[None, :], b * s + t


def fold_attention_params(params, act_dtype=jnp.float32, eps=1e-5):
    """Fold BN into the 1x1 convs ONCE (hoisted out of the per-call jit)."""
    wg_f, bg_f = _fold_bn(params["wg_w"], params["wg_b"],
                          params["bn_g_gamma"], params["bn_g_beta"],
                          params["bn_g_mean"], params["bn_g_var"], eps)
    wx_f, bx_f = _fold_bn(params["wx_w"], params["wx_b"],
                          params["bn_x_gamma"], params["bn_x_beta"],
                          params["bn_x_mean"], params["bn_x_var"], eps)
    wp_f, bp_f = _fold_bn(params["psi_w"], params["psi_b"],
                          params["bn_p_gamma"], params["bn_p_beta"],
                          params["bn_p_mean"], params["bn_p_var"], eps)
    cm = wg_f.shape[1]
    use_mxu_psi = cm >= 64
    wpsi = wp_f.reshape(1, -1) if use_mxu_psi else wp_f.reshape(-1, 1)
    return {
        # Activation-dtype channel-mix weights (MXU accumulates in f32).
        "wgT": jnp.transpose(wg_f).astype(act_dtype),      # (Cm, Cg)
        "wxT": jnp.transpose(wx_f).astype(act_dtype),      # (Cm, Cx)
        # Biases / psi stay f32 (added to the f32 accumulator).
        "b": (bg_f + bx_f).reshape(-1, 1),                 # (Cm, 1)
        "wpsi": wpsi,                                      # (1,Cm) or (Cm,1)
        "bpsi": bp_f.reshape(1, 1),                        # (1, 1)
    }


def make_params(key, g_channels, x_channels, mid_channels, dtype=jnp.float32):
    ks = jax.random.split(key, 12)
    p = {}
    # Conv weights stored as (Cin, Cout); equivalent to PyTorch Conv2d weight
    # (Cout, Cin, 1, 1) transposed.
    p["wg_w"] = jax.random.normal(ks[0], (g_channels, mid_channels), dtype) * 0.1
    p["wg_b"] = jax.random.normal(ks[1], (mid_channels,), dtype) * 0.1
    p["wx_w"] = jax.random.normal(ks[2], (x_channels, mid_channels), dtype) * 0.1
    p["wx_b"] = jax.random.normal(ks[3], (mid_channels,), dtype) * 0.1
    p["psi_w"] = jax.random.normal(ks[4], (mid_channels, 1), dtype) * 0.1
    p["psi_b"] = jax.random.normal(ks[5], (1,), dtype) * 0.1
    # BatchNorm (inference) parameters.
    p["bn_g_gamma"] = 1.0 + 0.1 * jax.random.normal(ks[6], (mid_channels,), dtype)
    p["bn_g_beta"] = 0.1 * jax.random.normal(ks[7], (mid_channels,), dtype)
    p["bn_g_mean"] = 0.1 * jax.random.normal(ks[8], (mid_channels,), dtype)
    p["bn_g_var"] = jnp.abs(1.0 + 0.1 * jax.random.normal(ks[9], (mid_channels,), dtype))
    p["bn_x_gamma"] = 1.0 + 0.05 * jax.random.normal(ks[10], (mid_channels,), dtype)
    p["bn_x_beta"] = jnp.zeros((mid_channels,), dtype)
    p["bn_x_mean"] = jnp.zeros((mid_channels,), dtype)
    p["bn_x_var"] = jnp.ones((mid_channels,), dtype)
    p["bn_p_gamma"] = jnp.array([1.05], dtype)
    p["bn_p_beta"] = jnp.array([0.02], dtype)
    p["bn_p_mean"] = jnp.array([0.01], dtype)
    p["bn_p_var"] = jnp.array([0.9], dtype)
    return p


# ------------------------------ public wrapper ------------------------------

def attention_block(g, x, folded_params):
    """g: (N, Cg, Hg, Wg), x: (N, Cx, H, W) -> (N, Cx, H, W), NCHW.

    `folded_params` comes from fold_attention_params (BN folded once); the
    activation dtype through HBM is the dtype the weights were folded to."""
    N, cg, _, _ = g.shape
    _, cx, H, W = x.shape
    act_dtype = jnp.dtype(folded_params["wgT"].dtype)
    cm = folded_params["b"].shape[0]
    use_mxu_psi = folded_params["wpsi"].shape[0] == 1

    tp, HWp, n_tiles, slices, vmem_limit = _choose_tiling(
        H * W, N, cg, cx, cm, act_dtype.itemsize)

    return _attention_block_impl(
        g, x, folded_params["wgT"], folded_params["wxT"], folded_params["b"],
        folded_params["wpsi"], folded_params["bpsi"],
        act_dtype=act_dtype, tp=tp, HWp=HWp, n_tiles=n_tiles, slices=slices,
        use_mxu_psi=use_mxu_psi, vmem_limit=vmem_limit)


# --------------------------- pure-JAX reference -----------------------------

def attention_block_ref(g, x, params):
    N, cg, hg, wg_sp = g.shape
    _, cx, H, W = x.shape
    diffY, diffX = H - hg, W - wg_sp
    g = jnp.pad(g, ((0, 0), (0, 0),
                    (diffY // 2, diffY - diffY // 2),
                    (diffX // 2, diffX - diffX // 2)))
    gl = jnp.transpose(g, (0, 2, 3, 1))
    xl = jnp.transpose(x, (0, 2, 3, 1))

    def bn(y, gm, bt, mu, vr, eps=1e-5):
        return (y - mu) / jnp.sqrt(vr + eps) * gm + bt

    g1 = bn(gl @ params["wg_w"] + params["wg_b"],
            params["bn_g_gamma"], params["bn_g_beta"],
            params["bn_g_mean"], params["bn_g_var"])
    x1 = bn(xl @ params["wx_w"] + params["wx_b"],
            params["bn_x_gamma"], params["bn_x_beta"],
            params["bn_x_mean"], params["bn_x_var"])
    a = jnp.maximum(g1 + x1, 0.0)
    p = bn(a @ params["psi_w"] + params["psi_b"],
           params["bn_p_gamma"], params["bn_p_beta"],
           params["bn_p_mean"], params["bn_p_var"])
    psi = jax.nn.sigmoid(p)
    out = xl * psi
    return jnp.transpose(out, (0, 3, 1, 2))


# ----------------------------------- main -----------------------------------

if __name__ == "__main__":
    key = jax.random.PRNGKey(0)
    k_g, k_x, k_p, k_g2, k_x2, k_p2 = jax.random.split(key, 6)

    # ---- Test 1: small-channel stage (VPU psi path); exercises F.pad branch.
    N = 2
    g_channels, x_channels, mid_channels = 6, 4, 8
    H = W = 16
    Hg = Wg = 14

    g = jax.random.normal(k_g, (N, g_channels, Hg, Wg), jnp.float32)
    x = jax.random.normal(k_x, (N, x_channels, H, W), jnp.float32)
    params = make_params(k_p, g_channels, x_channels, mid_channels)
    ref = attention_block_ref(g, x, params)

    # f32 activations: tight check against the f32 reference.
    folded_f32 = fold_attention_params(params, act_dtype=jnp.float32)
    out = jax.block_until_ready(attention_block(g, x, folded_f32))
    assert out.shape == (N, x_channels, H, W)
    assert jnp.allclose(out, ref, atol=1e-5, rtol=1e-5), \
        f"f32 max abs err {jnp.max(jnp.abs(out - ref))}"

    # bf16 activations through HBM (f32 accumulation inside): loose check.
    folded_bf16 = fold_attention_params(params, act_dtype=jnp.bfloat16)
    out_bf16 = jax.block_until_ready(attention_block(g, x, folded_bf16))
    assert out_bf16.dtype == jnp.bfloat16
    err_bf16 = jnp.max(jnp.abs(out_bf16.astype(jnp.float32) - ref))
    assert err_bf16 < 6e-2, f"bf16 max abs err {err_bf16}"

    # ---- Test 2: large-channel stage (MXU psi path), matching spatial shapes
    # (pad skipped via the static guard).
    g_channels2, x_channels2, mid_channels2 = 160, 96, 128
    H2 = W2 = 16
    g2 = jax.random.normal(k_g2, (N, g_channels2, H2, W2), jnp.float32)
    x2 = jax.random.normal(k_x2, (N, x_channels2, H2, W2), jnp.float32)
    params2 = make_params(k_p2, g_channels2, x_channels2, mid_channels2)
    ref2 = attention_block_ref(g2, x2, params2)

    folded2 = fold_attention_params(params2, act_dtype=jnp.float32)
    out2 = jax.block_until_ready(attention_block(g2, x2, folded2))
    assert out2.shape == (N, x_channels2, H2, W2)
    assert jnp.allclose(out2, ref2, atol=1e-4, rtol=1e-4), \
        f"f32 max abs err {jnp.max(jnp.abs(out2 - ref2))}"

    print("KERNEL_OK")
</pallas_src>

<mosaic_0001>
module attributes {stable_mosaic.version = 11 : i64} {
  func.func @_attention_block_kernel(%arg0: i32, %arg1: i32, %arg2: memref<1x6x256xf32, #tpu.memory_space<vmem>>, %arg3: memref<1x4x256xf32, #tpu.memory_space<vmem>>, %arg4: memref<8x6xf32, #tpu.memory_space<vmem>>, %arg5: memref<8x4xf32, #tpu.memory_space<vmem>>, %arg6: memref<8x1xf32, #tpu.memory_space<vmem>>, %arg7: memref<8x1xf32, #tpu.memory_space<vmem>>, %arg8: memref<1x1xf32, #tpu.memory_space<vmem>>, %arg9: memref<1x4x256xf32, #tpu.memory_space<vmem>>) attributes {dimension_semantics = [#tpu.dimension_semantics<parallel>, #tpu.dimension_semantics<parallel>], iteration_bounds = array<i64: 2, 1>, scalar_prefetch = 0 : i64, scratch_operands = 0 : i64, tpu.core_type = #tpu.core_type<tc>, window_params = [{transform_indices = @transform_0, window_bounds = array<i64: 1, 6, 256>}, {transform_indices = @transform_1, window_bounds = array<i64: 1, 4, 256>}, {pipeline_mode = #tpu.pipeline_mode<synchronous>, transform_indices = @transform_2, window_bounds = array<i64: 8, 6>}, {pipeline_mode = #tpu.pipeline_mode<synchronous>, transform_indices = @transform_3, window_bounds = array<i64: 8, 4>}, {pipeline_mode = #tpu.pipeline_mode<synchronous>, transform_indices = @transform_4, window_bounds = array<i64: 8, 1>}, {pipeline_mode = #tpu.pipeline_mode<synchronous>, transform_indices = @transform_5, window_bounds = array<i64: 8, 1>}, {pipeline_mode = #tpu.pipeline_mode<synchronous>, transform_indices = @transform_6, window_bounds = array<i64: 1, 1>}, {transform_indices = @transform_7, window_bounds = array<i64: 1, 4, 256>}]} {
    %c0 = arith.constant 0 : index
    %c0_0 = arith.constant 0 : index
    %0 = vector.load %arg4[%c0, %c0_0] : memref<8x6xf32, #tpu.memory_space<vmem>>, vector<8x6xf32>
    %c0_1 = arith.constant 0 : index
    %c0_2 = arith.constant 0 : index
    %1 = vector.load %arg5[%c0_1, %c0_2] : memref<8x4xf32, #tpu.memory_space<vmem>>, vector<8x4xf32>
    %c0_3 = arith.constant 0 : index
    %c0_4 = arith.constant 0 : index
    %2 = vector.load %arg6[%c0_3, %c0_4] : memref<8x1xf32, #tpu.memory_space<vmem>>, vector<8x1xf32>
    %c0_5 = arith.constant 0 : index
    %c0_6 = arith.constant 0 : index
    %3 = vector.load %arg7[%c0_5, %c0_6] : memref<8x1xf32, #tpu.memory_space<vmem>>, vector<8x1xf32>
    %c0_7 = arith.constant 0 : index
    %c0_8 = arith.constant 0 : index
    %4 = vector.load %arg8[%c0_7, %c0_8] : memref<1x1xf32, #tpu.memory_space<vmem>>, vector<1x1xf32>
    %c0_9 = arith.constant 0 : index
    %c0_10 = arith.constant 0 : index
    %c0_11 = arith.constant 0 : index
    %5 = vector.load %arg2[%c0_9, %c0_10, %c0_11] : memref<1x6x256xf32, #tpu.memory_space<vmem>>, vector<1x6x256xf32>
    %6 = vector.shape_cast %5 : vector<1x6x256xf32> to vector<6x256xf32>
    %c0_12 = arith.constant 0 : index
    %c0_13 = arith.constant 0 : index
    %c0_14 = arith.constant 0 : index
    %7 = vector.load %arg3[%c0_12, %c0_13, %c0_14] : memref<1x4x256xf32, #tpu.memory_space<vmem>>, vector<1x4x256xf32>
    %8 = vector.shape_cast %7 : vector<1x4x256xf32> to vector<4x256xf32>
    %cst = arith.constant dense<0.000000e+00> : vector<8x256xf32>
    %9 = tpu.matmul %0, %6, %cst {dimension_numbers = #tpu.dot_dimension_numbers<[1], [0], [0], [1], [0, 0, 1, 1], [], []>} : vector<8x6xf32>, vector<6x256xf32>, vector<8x256xf32> -> vector<8x256xf32>
    %cst_15 = arith.constant dense<0.000000e+00> : vector<8x256xf32>
    %10 = tpu.matmul %1, %8, %cst_15 {dimension_numbers = #tpu.dot_dimension_numbers<[1], [0], [0], [1], [0, 0, 1, 1], [], []>} : vector<8x4xf32>, vector<4x256xf32>, vector<8x256xf32> -> vector<8x256xf32>
    %11 = arith.addf %9, %10 : vector<8x256xf32>
    %12 = vector.broadcast %2 : vector<8x1xf32> to vector<8x256xf32>
    %13 = arith.addf %11, %12 : vector<8x256xf32>
    %cst_16 = arith.constant 0.000000e+00 : f32
    %14 = vector.broadcast %cst_16 : f32 to vector<8x256xf32>
    %15 = arith.maximumf %13, %14 : vector<8x256xf32>
    %16 = vector.broadcast %3 : vector<8x1xf32> to vector<8x256xf32>
    %17 = arith.mulf %15, %16 : vector<8x256xf32>
    %cst_17 = arith.constant dense<0.000000e+00> : vector<256xf32>
    %18 = vector.multi_reduction <add>, %17, %cst_17 [0] : vector<8x256xf32> to vector<256xf32>
    %19 = vector.shape_cast %18 : vector<256xf32> to vector<1x256xf32>
    %20 = vector.broadcast %4 : vector<1x1xf32> to vector<1x256xf32>
    %21 = arith.addf %19, %20 : vector<1x256xf32>
    %22 = arith.negf %21 : vector<1x256xf32>
    %23 = math.exp %22 : vector<1x256xf32>
    %cst_18 = arith.constant 1.000000e+00 : f32
    %24 = vector.broadcast %cst_18 : f32 to vector<1x256xf32>
    %25 = arith.addf %24, %23 : vector<1x256xf32>
    %26 = arith.divf %24, %25 : vector<1x256xf32>
    %27 = vector.broadcast %26 : vector<1x256xf32> to vector<4x256xf32>
    %28 = arith.mulf %8, %27 : vector<4x256xf32>
    %c0_19 = arith.constant 0 : index
    %c0_20 = arith.constant 0 : index
    %c0_21 = arith.constant 0 : index
    %29 = vector.load %arg9[%c0_19, %c0_20, %c0_21] : memref<1x4x256xf32, #tpu.memory_space<vmem>>, vector<1x4x256xf32>
    %30 = vector.shape_cast %29 : vector<1x4x256xf32> to vector<4x256xf32>
    %31 = vector.shape_cast %28 : vector<4x256xf32> to vector<1x4x256xf32>
    tpu.vector_store %arg9[%c0_19, %c0_20, %c0_21], %31 {strides = array<i32>} : memref<1x4x256xf32, #tpu.memory_space<vmem>>, vector<1x4x256xf32>,
    return
  }
  func.func @transform_0(%arg0: i32, %arg1: i32) -> (i32, i32, i32) {
    %c0_i32 = arith.constant 0 : i32
    %c0_i32_0 = arith.constant 0 : i32
    return %arg0, %c0_i32, %arg1 : i32, i32, i32
  }
  func.func @transform_1(%arg0: i32, %arg1: i32) -> (i32, i32, i32) {
    %c0_i32 = arith.constant 0 : i32
    %c0_i32_0 = arith.constant 0 : i32
    return %arg0, %c0_i32, %arg1 : i32, i32, i32
  }
  func.func @transform_2(%arg0: i32, %arg1: i32) -> (i32, i32) {
    %c0_i32 = arith.constant 0 : i32
    %c0_i32_0 = arith.constant 0 : i32
    %c0_i32_1 = arith.constant 0 : i32
    return %c0_i32, %c0_i32_0 : i32, i32
  }
  func.func @transform_3(%arg0: i32, %arg1: i32) -> (i32, i32) {
    %c0_i32 = arith.constant 0 : i32
    %c0_i32_0 = arith.constant 0 : i32
    %c0_i32_1 = arith.constant 0 : i32
    return %c0_i32, %c0_i32_0 : i32, i32
  }
  func.func @transform_4(%arg0: i32, %arg1: i32) -> (i32, i32) {
    %c0_i32 = arith.constant 0 : i32
    %c0_i32_0 = arith.constant 0 : i32
    %c0_i32_1 = arith.constant 0 : i32
    return %c0_i32, %c0_i32_0 : i32, i32
  }
  func.func @transform_5(%arg0: i32, %arg1: i32) -> (i32, i32) {
    %c0_i32 = arith.constant 0 : i32
    %c0_i32_0 = arith.constant 0 : i32
    %c0_i32_1 = arith.constant 0 : i32
    return %c0_i32, %c0_i32_0 : i32, i32
  }
  func.func @transform_6(%arg0: i32, %arg1: i32) -> (i32, i32) {
    %c0_i32 = arith.constant 0 : i32
    %c0_i32_0 = arith.constant 0 : i32
    %c0_i32_1 = arith.constant 0 : i32
    return %c0_i32, %c0_i32_0 : i32, i32
  }
  func.func @transform_7(%arg0: i32, %arg1: i32) -> (i32, i32, i32) {
    %c0_i32 = arith.constant 0 : i32
    %c0_i32_0 = arith.constant 0 : i32
    return %arg0, %c0_i32, %arg1 : i32, i32, i32
  }
}

</mosaic_0001>

<bundles_post_ra>
// kernel: _attention_block_impl.1
= control target key start
LH: loop header
LB: loop body
LE: loop exit
PB: predicated region body
PF: predicated region fallthrough
CT: control target
= control target key end

     0   :  { %s820_s26 = smov 0   ;;  %s822_s27 = smov 0   ;;  %s876_s0 = inlined_call_operand.vmem [shape: f32[2,6,256], index: 0, kind: input, shape index: {}]   ;;  %s877_s1 = inlined_call_operand.vmem [shape: f32[2,4,256], index: 1, kind: input, shape index: {}]   ;;  %s878_s2 = inlined_call_operand.vmem [shape: f32[8,6], index: 2, kind: input, shape index: {}]   ;;  %s879_s3 = inlined_call_operand.vmem [shape: f32[8,4], index: 3, kind: input, shape index: {}]   ;;  %s880_s4 = inlined_call_operand.vmem [shape: f32[8,1], index: 4, kind: input, shape index: {}]   ;;  %s881_s5 = inlined_call_operand.vmem [shape: f32[8,1], index: 5, kind: input, shape index: {}]   ;;  %s882_s6 = inlined_call_operand.<no memory space> [shape: f32[1,1], index: 6, kind: input, shape index: {}]   ;;  %s883_s7 = inlined_call_operand.vmem [shape: f32[2,4,256], index: 7, kind: output, shape index: {}]  }
   0x1   :  { %v12_v0 = vstv %s882_s6  ;;  %s824_s28 = smov 0  }
   0x2   :  { %13 = vst [vmem:[#allocation2] sm:$0x1] %v12_v0 }
   0x3 LB: > { %s31_s6 = sadd.s32 1, %s769_s27  ;;  %p694_p0 = scmp.ge.s32.totalorder %s773_s28, 1  ;;  %s773_s28 = sphi %s824_s28, %s19_s28   ;;  %s769_s27 = sphi %s822_s27, %s885_s27   ;;  %s765_s26 = sphi %s820_s26, %s884_s26  }
   0x4   : > { %p33_p1 = scmp.ge.s32.totalorder %s31_s6, 2  ;;  %p277_p2 = scmp.lt.s32.totalorder %s773_s28, 3 }
   0x6   : > { %s887_s6 = smov (%p33_p1, %s31_s6), 0  ;;  %p278_p3 = pnand %p694_p0, %p277_p2 }
   0x7   : > { %p327_p4 = scmp.lt.s32.totalorder (!%p278_p3), %s765_s26, 1 }
   0x8   : > { %281 = sbr.rel (%p278_p3) target bundleno = 277 (0x115), region = 48 }
   0xd   : > { %v775_v1 = vmov 0.0   ;;  %v358_v2 = vld [vmem:[%s880_s4] sm:$0xff]  ;;  %s889_s26 = smov (!%p327_p4, %s765_s26), 1  ;;  %v776_v3 = vmov 0   ;;  %vm450_vm0 = vcmask 1045504   ;;  %vm370_vm1 = vcmask 1043456  }
   0xe   : > { %521 = vmatprep.mubr.f32.mxu1 %v775_v1  ;;  %439 = vmatprep.mubr.f32.mxu0 %v775_v1  ;;  %v360_v4 = vld [vmem:[#allocation2] sm:$0x1]  ;;  %s711_s8 = sshll.u32 %s889_s26, 4  ;;  %s712_s9 = sshll.u32 %s889_s26, 3  ;;  %vm446_vm2 = vcmask 48128   ;;  %vm366_vm3 = vcmask 31744   ;;  %v561_v22 = vlaneseq }
   0xf   : > { %740 = vset.pattern.permute.xlu0 %v776_v3  ;;  %741 = vset.pattern.permute.xlu1 %v776_v3  ;;  %v359_v5 = vld [vmem:[%s881_s5] sm:$0xff]  ;;  %s334_s14 = scalar_lea.vmem %s876_s0, %s711_s8  ;;  %s344_s17 = scalar_lea.vmem %s877_s1, %s712_s9 }
  0x10   : > { %530 = vperm.xlu0 %740, %v358_v2   ;;  %558 = vperm.xlu1 %741, %v360_v4   ;;  %v356_v6 = vld [vmem:[%s878_s2] sm:$0xff]  ;;  %v362_v7 = vld [vmem:[%s334_s14 + $0x8] sm:$0x3f]  ;;  %v562_v28 = vshrl.u32 %v561_v22, 7  ;;  %s354_s24 = scalar_lea.vmem %s883_s7, %s712_s9 }
  0x11   : > { %v361_v8 = vld [vmem:[%s334_s14] sm:$0x3f]  ;;  %704 = vmatprep.subr.msk.mxu1 %vm450_vm0, %v362_v7 }
  0x12   : > { %v363_v9 = vld [vmem:[%s344_s17] sm:$0xff]  ;;  %705 = vmatpush1.msk.msra.mxu1 %vm450_vm0, %v361_v8  ;;  %v563_v33 = vsub.s32 0, %v562_v28 }
  0x13   : > { %v365_v10 = vcombine.high %v363_v9, %v363_v9  ;;  %v357_v11 = vld [vmem:[%s879_s3] sm:$0xff]  ;;  %706 = vmatmul.mubr.msk.f32.vlgmr.msra.gmra.mxu1 %vm446_vm2, %v356_v6 }
  0x14   : > { %539 = vperm.xlu0 %740, %v359_v5  }
  0x15   : > { %701 = vmatprep.subr.msk.mxu0 %vm370_vm1, %v365_v10 }
  0x16   : > { %702 = vmatpush1.msk.msra.mxu0 %vm370_vm1, %v363_v9 }
  0x17   : > { %703 = vmatmul.mubr.msk.f32.vlgmr.msra.gmra.mxu0 %vm366_vm3, %v357_v11 }
  0x8b   : > { %v531_v13 = vpop.permute.xlu0 %530  ;;  %v559_v34 = vpop.permute.xlu1 %558 }
  0x8c   : > { %v564_v39 = vrot.slane %v559_v34, %v563_v33 }
  0x8f   : > { %v540_v23 = vpop.permute.xlu0 %539 }
  0xd3   : > { %v523_v12 = vpop.f32.mrf.mxu1 }
  0xd5   : > { %v525_v16 = vpop.f32.mrf.mxu1 }
  0xd7   : > { %v441_v14 = vpop.f32.mrf.mxu0 }
  0xd8   : > { %v524_v15 = vadd.f32 %v523_v12, %v441_v14 }
  0xd9   : > { %v443_v17 = vpop.f32.mrf.mxu0 }
  0xda   : > { %v533_v18 = vadd.f32 %v531_v13, %v524_v15  ;;  %v526_v19 = vadd.f32 %v525_v16, %v443_v17 }
  0xdc   : > { %v534_v20 = vadd.f32 %v531_v13, %v526_v19  ;;  %v535_v21 = vmax.f32 %v533_v18, 0.0 }
  0xde   : > { %v536_v24 = vmax.f32 %v534_v20, 0.0  ;;  %v542_v25 = vmul.f32 %v540_v23, %v535_v21 }
  0xe0   : > { %v543_v26 = vmul.f32 %v540_v23, %v536_v24  ;;  %v544_v27 = vrot.slane %v542_v25, 4 }
  0xe2   : > { %v545_v29 = vadd.f32 %v544_v27, %v542_v25  ;;  %v550_v30 = vrot.slane %v543_v26, 4 }
  0xe4   : > { %v546_v31 = vrot.slane %v545_v29, 2  ;;  %v551_v32 = vadd.f32 %v550_v30, %v543_v26 }
  0xe6   : > { %v547_v35 = vadd.f32 %v546_v31, %v545_v29  ;;  %v552_v36 = vrot.slane %v551_v32, 2 }
  0xe8   : > { %v553_v37 = vadd.f32 %v552_v36, %v551_v32  ;;  %v548_v38 = vrot.slane %v547_v35, 1 }
  0xea   : > { %v549_v40 = vadd.f32 %v548_v38, %v547_v35  ;;  %v554_v41 = vrot.slane %v553_v37, 1 }
  0xec   : > { %v555_v42 = vadd.f32 %v554_v41, %v553_v37  ;;  %v565_v43 = vadd.f32 %v564_v39, %v549_v40 }
  0xee   : > { %v566_v44 = vadd.f32 %v564_v39, %v555_v42  ;;  %v707_v45 = vmul.f32 -1.442695, %v565_v43 }
  0xf0   : > { %743 = vpow2.f32 %v707_v45  ;;  %v708_v46 = vmul.f32 -1.442695, %v566_v44 }
  0xf2   : > { %745 = vpow2.f32 %v708_v46 }
  0xfd   : > { %v744_v47 = vpop.eup %743 }
  0xfe   : > { %v573_v48 = vadd.f32 1.0, %v744_v47 }
  0xff   : > { %v746_v49 = vpop.eup %745 }
 0x100   : > { %v574_v50 = vadd.f32 1.0, %v746_v49  ;;  %747 = vrcp.f32 %v573_v48 }
 0x102   : > { %749 = vrcp.f32 %v574_v50 }
 0x10d   : > { %v748_v51 = vpop.eup %747 }
 0x10f   : > { %v750_v52 = vpop.eup %749 }
 0x110   : > { %v581_v53 = vcombine.low %v748_v51, %v750_v52 }
 0x112   : > { %v583_v54 = vmul.f32 %v581_v53, %v363_v9 }
 0x114   : > { %584 = vst [vmem:[%s354_s24] sm:$0xff] %v583_v54 }
 0x115 PF: > { %s19_s28 = sadd.s32 1, %s773_s28   ;;  %s884_s26 = smov %s769_s27 }
 0x116   : > { %p16_p5 = scmp.ge.s32.totalorder %s19_s28, 4   ;;  %s885_s27 = smov %s887_s6 }
 0x118   :  { %18 = sbr.rel (!%p16_p5) target bundleno = 3 (0x3), region = 81 }

</bundles_post_ra>
